<compile_context>
chip_gen: v7x
topology: tpu7x:2x2x1
jax: 0.10.0
libtpu: 0.0.40
codegen_flags: <defaults>
</compile_context>

<pallas_src>
import functools

import jax
import jax.numpy as jnp
from jax.experimental import pallas as pl
from jax.experimental.pallas import tpu as pltpu


def _round_up(x, m):
    return ((x + m - 1) // m) * m


def _vmem_budget_bytes():
    """Tile-sizing budget: a conservative fraction of this chip's VMEM."""
    try:
        cap = pltpu.get_tpu_info().vmem_capacity_bytes
    except Exception:
        cap = 64 * 1024 * 1024  # assume the smallest (v7x per-core) VMEM
    return min(cap // 4, 16 * 1024 * 1024)


def _accumulate_taps(get_tap, w_ref, b_col, kernel_size, out_dtype):
    """y = bias + sum_j W_j @ x_shifted_j, accumulated in f32 on the MXU."""
    acc = None
    for j in range(kernel_size):
        part = jnp.dot(w_ref[j], get_tap(j), preferred_element_type=jnp.float32)
        acc = part if acc is None else acc + part
    return (acc + b_col).astype(out_dtype)


def _single_tile_kernel(x_ref, w_ref, b_ref, o_ref, *, kernel_size, dilation):
    # x_ref: (b_blk, C_in, halo + T) with `halo` leading zeros already in HBM.
    # Tap j of output column t reads padded column t + j*dilation.
    b_blk = x_ref.shape[0]
    t_out = o_ref.shape[2]
    b_col = b_ref[...]                      # (C_out, 1), f32
    for bi in range(b_blk):                 # static loop, small b_blk
        o_ref[bi] = _accumulate_taps(
            lambda j, bi=bi: x_ref[bi, :, pl.ds(j * dilation, t_out)],
            w_ref, b_col, kernel_size, o_ref.dtype)


def _tiled_kernel(x_ref, w_ref, b_ref, o_ref, xbuf_ref, *,
                  kernel_size, dilation, halo):
    # xbuf_ref: (b_blk, C_in, halo + t_tile) persistent across the t axis;
    # columns [0, halo) hold the previous tile's last `halo` timesteps.
    t_idx = pl.program_id(1)
    b_blk, _, t_tile = x_ref.shape

    @pl.when(t_idx == 0)
    def _():                                # causal zero history per batch block
        xbuf_ref[...] = jnp.zeros_like(xbuf_ref)

    # Stage the current tile after the halo (single in-VMEM copy, no concats).
    xbuf_ref[:, :, pl.ds(halo, t_tile)] = x_ref[...]

    b_col = b_ref[...]
    for bi in range(b_blk):
        o_ref[bi] = _accumulate_taps(
            lambda j, bi=bi: xbuf_ref[bi, :, pl.ds(j * dilation, t_tile)],
            w_ref, b_col, kernel_size, o_ref.dtype)

    # Carry the most recent `halo` timesteps for the next time tile.
    @pl.when(t_idx != pl.num_programs(1) - 1)
    def _():
        tail = xbuf_ref[:, :, pl.ds(t_tile, halo)]
        xbuf_ref[:, :, pl.ds(0, halo)] = tail


def causal_conv1d(x, weight, bias, *, dilation=1, t_tile=None, b_blk=None):
    """x: (B, C_in, T); weight: (C_out, C_in, K) (PyTorch Conv1d layout);
    bias: (C_out,).  Returns y: (B, C_out, T)."""
    B, C_in, T = x.shape
    C_out, C_in_w, K = weight.shape
    assert C_in_w == C_in
    halo = (K - 1) * dilation
    assert halo > 0, "CausalConv1d needs (kernel_size - 1) * dilation > 0"

    dtype = x.dtype
    itemsize = jnp.dtype(dtype).itemsize
    # Per-tap weights (K, C_out, C_in) in the I/O dtype (bf16 x => bf16 MXU);
    # bias as an f32 column so it broadcasts over the time lanes.
    w_k = jnp.transpose(weight, (0, 2, 1)).transpose(1, 0, 2)  # (K, C_out, C_in)
    w_k = jnp.transpose(weight, (2, 0, 1)).astype(dtype)
    b_col = bias.reshape(C_out, 1).astype(jnp.float32)

    # VMEM bytes per time column: double-buffered x & y blocks, staging buffer,
    # plus the f32 accumulator / tap-slice working set.  Weight charged once.
    def per_col(bb):
        return ((3 * bb * C_in + 2 * bb * C_out) * itemsize
                + C_out * 4 + C_in * itemsize)

    budget = _vmem_budget_bytes() - 2 * K * C_out * max(C_in, 128) * itemsize
    budget = max(budget, 2 * 1024 * 1024)
    vmem_limit = 32 * 1024 * 1024

    if t_tile is None:
        max_cols = max(int(budget // per_col(1)), 128)
        if max_cols >= halo + T:
            t_tile = T                                  # full T fits: no tiling
        else:
            t_tile = max(128 * (max_cols // 128), _round_up(halo, 128))

    if t_tile >= T:
        # ---------- single-tile path: no time tiling, no carry ----------
        width = halo + T
        if b_blk is None:
            b_blk = 1
            for cand in range(B, 0, -1):
                if B % cand == 0 and per_col(cand) * width <= budget:
                    b_blk = cand
                    break
        assert B % b_blk == 0
        x_pad = jnp.pad(x, ((0, 0), (0, 0), (halo, 0)))   # causal zero history
        kernel = functools.partial(_single_tile_kernel,
                                   kernel_size=K, dilation=dilation)
        # TODO(synk): on v7x, when B // b_blk < 2, split T into independent
        # halo-padded segments so both TensorCores get work.
        return pl.pallas_call(
            kernel,
            out_shape=jax.ShapeDtypeStruct((B, C_out, T), dtype),
            grid_spec=pltpu.PrefetchScalarGridSpec(
                num_scalar_prefetch=0,
                grid=(B // b_blk,),
                in_specs=[
                    pl.BlockSpec((b_blk, C_in, width), lambda b: (b, 0, 0)),
                    pl.BlockSpec((K, C_out, C_in), lambda b: (0, 0, 0)),
                    pl.BlockSpec((C_out, 1), lambda b: (0, 0)),
                ],
                out_specs=pl.BlockSpec((b_blk, C_out, T), lambda b: (b, 0, 0)),
            ),
            compiler_params=pltpu.CompilerParams(
                dimension_semantics=("parallel",),
                vmem_limit_bytes=vmem_limit),
        )(x_pad, w_k, b_col)

    # ---------- tiled path: time tiled, causal carry in VMEM scratch ----------
    t_tile = max(t_tile, _round_up(halo, 128))
    assert t_tile % 128 == 0, "t_tile must be a multiple of 128 when tiling T"
    if b_blk is None:
        b_blk = 1
        for cand in range(B, 0, -1):
            if B % cand == 0 and per_col(cand) * (t_tile + halo) <= budget:
                b_blk = cand
                break
    assert B % b_blk == 0

    T_pad = _round_up(T, t_tile)
    n_t = T_pad // t_tile
    x_p = jnp.pad(x, ((0, 0), (0, 0), (0, T_pad - T))) if T_pad != T else x
    kernel = functools.partial(_tiled_kernel, kernel_size=K,
                               dilation=dilation, halo=halo)
    y = pl.pallas_call(
        kernel,
        out_shape=jax.ShapeDtypeStruct((B, C_out, T_pad), dtype),
        grid_spec=pltpu.PrefetchScalarGridSpec(
            num_scalar_prefetch=0,
            grid=(B // b_blk, n_t),
            in_specs=[
                pl.BlockSpec((b_blk, C_in, t_tile), lambda b, t: (b, 0, t)),
                pl.BlockSpec((K, C_out, C_in), lambda b, t: (0, 0, 0)),
                pl.BlockSpec((C_out, 1), lambda b, t: (0, 0)),
            ],
            out_specs=pl.BlockSpec((b_blk, C_out, t_tile), lambda b, t: (b, 0, t)),
            scratch_shapes=[pltpu.VMEM((b_blk, C_in, halo + t_tile), dtype)],
        ),
        compiler_params=pltpu.CompilerParams(
            dimension_semantics=("parallel", "arbitrary"),
            vmem_limit_bytes=vmem_limit),
    )(x_p, w_k, b_col)
    return y[..., :T] if T_pad != T else y


def ref_causal_conv1d(x, weight, bias, *, dilation=1):
    """Pure-JAX reference: Conv1d(padding=pad, dilation=d)(x)[..., :-pad]."""
    pad = (weight.shape[-1] - 1) * dilation
    y = jax.lax.conv_general_dilated(
        x, weight, window_strides=(1,), padding=[(pad, 0)],
        rhs_dilation=(dilation,), dimension_numbers=("NCH", "OIH", "NCH"),
        precision=jax.lax.Precision.HIGHEST)
    return y + bias[None, :, None]


if __name__ == "__main__":
    key = jax.random.PRNGKey(0)

    # Config 1: small shapes matching the module (kernel_size=2, dilation=2);
    # exercises the single-tile (no-carry) path with batch blocking.
    B, C_in, C_out, K, D, T = 2, 4, 8, 2, 2, 16
    k1, k2, k3, key = jax.random.split(key, 4)
    x = jax.random.normal(k1, (B, C_in, T), jnp.float32)
    w = 0.25 * jax.random.normal(k2, (C_out, C_in, K), jnp.float32)
    b = 0.25 * jax.random.normal(k3, (C_out,), jnp.float32)
    y = jax.block_until_ready(causal_conv1d(x, w, b, dilation=D))
    y_ref = ref_causal_conv1d(x, w, b, dilation=D)
    assert y.shape == (B, C_out, T)
    assert jnp.allclose(y, y_ref, atol=1e-4, rtol=1e-4), "config 1 mismatch"

    # Config 2: forces the tiled path (t_tile=128), exercising the cross-tile
    # causal carry and the trailing-T zero padding (T=200 -> T_pad=256).
    B, C_in, C_out, K, D, T = 2, 8, 16, 3, 4, 200
    k1, k2, k3, key = jax.random.split(key, 4)
    x = jax.random.normal(k1, (B, C_in, T), jnp.float32)
    w = 0.25 * jax.random.normal(k2, (C_out, C_in, K), jnp.float32)
    b = 0.25 * jax.random.normal(k3, (C_out,), jnp.float32)
    y = jax.block_until_ready(causal_conv1d(x, w, b, dilation=D, t_tile=128))
    y_ref = ref_causal_conv1d(x, w, b, dilation=D)
    assert y.shape == (B, C_out, T)
    assert jnp.allclose(y, y_ref, atol=1e-4, rtol=1e-4), "config 2 mismatch"

    # Config 3: bf16 end-to-end I/O (halves HBM traffic; f32 accumulation).
    B, C_in, C_out, K, D, T = 2, 8, 16, 2, 8, 512
    k1, k2, k3, key = jax.random.split(key, 4)
    x = jax.random.normal(k1, (B, C_in, T), jnp.float32).astype(jnp.bfloat16)
    w = (0.25 * jax.random.normal(k2, (C_out, C_in, K), jnp.float32)
         ).astype(jnp.bfloat16)
    b = 0.25 * jax.random.normal(k3, (C_out,), jnp.float32)
    y = jax.block_until_ready(causal_conv1d(x, w, b, dilation=D))
    y_ref = ref_causal_conv1d(x.astype(jnp.float32), w.astype(jnp.float32), b,
                              dilation=D)
    assert y.dtype == jnp.bfloat16
    assert jnp.allclose(y.astype(jnp.float32), y_ref, atol=5e-2, rtol=5e-2), \
        "config 3 mismatch"

    print("KERNEL_OK")
</pallas_src>

<mosaic_0001>
module attributes {stable_mosaic.version = 11 : i64} {
  func.func @_single_tile_kernel(%arg0: i32, %arg1: memref<2x4x18xf32, #tpu.memory_space<vmem>>, %arg2: memref<2x8x4xf32, #tpu.memory_space<vmem>>, %arg3: memref<8x1xf32, #tpu.memory_space<vmem>>, %arg4: memref<2x8x16xf32, #tpu.memory_space<vmem>>) attributes {dimension_semantics = [#tpu.dimension_semantics<parallel>], iteration_bounds = array<i64: 1>, scalar_prefetch = 0 : i64, scratch_operands = 0 : i64, tpu.core_type = #tpu.core_type<tc>, window_params = [{transform_indices = @transform_0, window_bounds = array<i64: 2, 4, 18>}, {pipeline_mode = #tpu.pipeline_mode<synchronous>, transform_indices = @transform_1, window_bounds = array<i64: 2, 8, 4>}, {pipeline_mode = #tpu.pipeline_mode<synchronous>, transform_indices = @transform_2, window_bounds = array<i64: 8, 1>}, {transform_indices = @transform_3, window_bounds = array<i64: 2, 8, 16>}]} {
    %c0 = arith.constant 0 : index
    %c0_0 = arith.constant 0 : index
    %0 = vector.load %arg3[%c0, %c0_0] : memref<8x1xf32, #tpu.memory_space<vmem>>, vector<8x1xf32>
    %c0_1 = arith.constant 0 : index
    %c0_2 = arith.constant 0 : index
    %c0_3 = arith.constant 0 : index
    %1 = vector.load %arg2[%c0_1, %c0_2, %c0_3] : memref<2x8x4xf32, #tpu.memory_space<vmem>>, vector<1x8x4xf32>
    %2 = vector.shape_cast %1 : vector<1x8x4xf32> to vector<8x4xf32>
    %c0_4 = arith.constant 0 : index
    %c0_5 = arith.constant 0 : index
    %c0_6 = arith.constant 0 : index
    %3 = vector.load %arg1[%c0_4, %c0_5, %c0_6] : memref<2x4x18xf32, #tpu.memory_space<vmem>>, vector<1x4x16xf32>
    %4 = vector.shape_cast %3 : vector<1x4x16xf32> to vector<4x16xf32>
    %cst = arith.constant dense<0.000000e+00> : vector<8x16xf32>
    %5 = tpu.matmul %2, %4, %cst {dimension_numbers = #tpu.dot_dimension_numbers<[1], [0], [0], [1], [0, 0, 1, 1], [], []>} : vector<8x4xf32>, vector<4x16xf32>, vector<8x16xf32> -> vector<8x16xf32>
    %c1 = arith.constant 1 : index
    %c0_7 = arith.constant 0 : index
    %c0_8 = arith.constant 0 : index
    %6 = vector.load %arg2[%c1, %c0_7, %c0_8] : memref<2x8x4xf32, #tpu.memory_space<vmem>>, vector<1x8x4xf32>
    %7 = vector.shape_cast %6 : vector<1x8x4xf32> to vector<8x4xf32>
    %c0_9 = arith.constant 0 : index
    %c0_10 = arith.constant 0 : index
    %c2 = arith.constant 2 : index
    %8 = vector.load %arg1[%c0_9, %c0_10, %c2] : memref<2x4x18xf32, #tpu.memory_space<vmem>>, vector<1x4x16xf32>
    %9 = vector.shape_cast %8 : vector<1x4x16xf32> to vector<4x16xf32>
    %cst_11 = arith.constant dense<0.000000e+00> : vector<8x16xf32>
    %10 = tpu.matmul %7, %9, %cst_11 {dimension_numbers = #tpu.dot_dimension_numbers<[1], [0], [0], [1], [0, 0, 1, 1], [], []>} : vector<8x4xf32>, vector<4x16xf32>, vector<8x16xf32> -> vector<8x16xf32>
    %11 = arith.addf %5, %10 : vector<8x16xf32>
    %12 = vector.broadcast %0 : vector<8x1xf32> to vector<8x16xf32>
    %13 = arith.addf %11, %12 : vector<8x16xf32>
    %c0_12 = arith.constant 0 : index
    %c0_13 = arith.constant 0 : index
    %c0_14 = arith.constant 0 : index
    %14 = vector.load %arg4[%c0_12, %c0_13, %c0_14] : memref<2x8x16xf32, #tpu.memory_space<vmem>>, vector<1x8x16xf32>
    %15 = vector.shape_cast %14 : vector<1x8x16xf32> to vector<8x16xf32>
    %16 = vector.shape_cast %13 : vector<8x16xf32> to vector<1x8x16xf32>
    tpu.vector_store %arg4[%c0_12, %c0_13, %c0_14], %16 {strides = array<i32>} : memref<2x8x16xf32, #tpu.memory_space<vmem>>, vector<1x8x16xf32>,
    %c0_15 = arith.constant 0 : index
    %c0_16 = arith.constant 0 : index
    %c0_17 = arith.constant 0 : index
    %17 = vector.load %arg2[%c0_15, %c0_16, %c0_17] : memref<2x8x4xf32, #tpu.memory_space<vmem>>, vector<1x8x4xf32>
    %18 = vector.shape_cast %17 : vector<1x8x4xf32> to vector<8x4xf32>
    %c1_18 = arith.constant 1 : index
    %c0_19 = arith.constant 0 : index
    %c0_20 = arith.constant 0 : index
    %19 = vector.load %arg1[%c1_18, %c0_19, %c0_20] : memref<2x4x18xf32, #tpu.memory_space<vmem>>, vector<1x4x16xf32>
    %20 = vector.shape_cast %19 : vector<1x4x16xf32> to vector<4x16xf32>
    %cst_21 = arith.constant dense<0.000000e+00> : vector<8x16xf32>
    %21 = tpu.matmul %18, %20, %cst_21 {dimension_numbers = #tpu.dot_dimension_numbers<[1], [0], [0], [1], [0, 0, 1, 1], [], []>} : vector<8x4xf32>, vector<4x16xf32>, vector<8x16xf32> -> vector<8x16xf32>
    %c1_22 = arith.constant 1 : index
    %c0_23 = arith.constant 0 : index
    %c0_24 = arith.constant 0 : index
    %22 = vector.load %arg2[%c1_22, %c0_23, %c0_24] : memref<2x8x4xf32, #tpu.memory_space<vmem>>, vector<1x8x4xf32>
    %23 = vector.shape_cast %22 : vector<1x8x4xf32> to vector<8x4xf32>
    %c1_25 = arith.constant 1 : index
    %c0_26 = arith.constant 0 : index
    %c2_27 = arith.constant 2 : index
    %24 = vector.load %arg1[%c1_25, %c0_26, %c2_27] : memref<2x4x18xf32, #tpu.memory_space<vmem>>, vector<1x4x16xf32>
    %25 = vector.shape_cast %24 : vector<1x4x16xf32> to vector<4x16xf32>
    %cst_28 = arith.constant dense<0.000000e+00> : vector<8x16xf32>
    %26 = tpu.matmul %23, %25, %cst_28 {dimension_numbers = #tpu.dot_dimension_numbers<[1], [0], [0], [1], [0, 0, 1, 1], [], []>} : vector<8x4xf32>, vector<4x16xf32>, vector<8x16xf32> -> vector<8x16xf32>
    %27 = arith.addf %21, %26 : vector<8x16xf32>
    %28 = vector.broadcast %0 : vector<8x1xf32> to vector<8x16xf32>
    %29 = arith.addf %27, %28 : vector<8x16xf32>
    %c1_29 = arith.constant 1 : index
    %c0_30 = arith.constant 0 : index
    %c0_31 = arith.constant 0 : index
    %30 = vector.load %arg4[%c1_29, %c0_30, %c0_31] : memref<2x8x16xf32, #tpu.memory_space<vmem>>, vector<1x8x16xf32>
    %31 = vector.shape_cast %30 : vector<1x8x16xf32> to vector<8x16xf32>
    %32 = vector.shape_cast %29 : vector<8x16xf32> to vector<1x8x16xf32>
    tpu.vector_store %arg4[%c1_29, %c0_30, %c0_31], %32 {strides = array<i32>} : memref<2x8x16xf32, #tpu.memory_space<vmem>>, vector<1x8x16xf32>,
    return
  }
  func.func @transform_0(%arg0: i32) -> (i32, i32, i32) {
    %c0_i32 = arith.constant 0 : i32
    %c0_i32_0 = arith.constant 0 : i32
    %c0_i32_1 = arith.constant 0 : i32
    return %arg0, %c0_i32, %c0_i32_0 : i32, i32, i32
  }
  func.func @transform_1(%arg0: i32) -> (i32, i32, i32) {
    %c0_i32 = arith.constant 0 : i32
    %c0_i32_0 = arith.constant 0 : i32
    %c0_i32_1 = arith.constant 0 : i32
    %c0_i32_2 = arith.constant 0 : i32
    return %c0_i32, %c0_i32_0, %c0_i32_1 : i32, i32, i32
  }
  func.func @transform_2(%arg0: i32) -> (i32, i32) {
    %c0_i32 = arith.constant 0 : i32
    %c0_i32_0 = arith.constant 0 : i32
    %c0_i32_1 = arith.constant 0 : i32
    return %c0_i32, %c0_i32_0 : i32, i32
  }
  func.func @transform_3(%arg0: i32) -> (i32, i32, i32) {
    %c0_i32 = arith.constant 0 : i32
    %c0_i32_0 = arith.constant 0 : i32
    %c0_i32_1 = arith.constant 0 : i32
    return %arg0, %c0_i32, %c0_i32_0 : i32, i32, i32
  }
}

</mosaic_0001>

<bundles_post_ra>
// kernel: tpu_custom_call.1
= control target key start
LH: loop header
LB: loop body
LE: loop exit
PB: predicated region body
PF: predicated region fallthrough
CT: control target
= control target key end

     0   :  { %s431_s14 = smov 126   ;;  %v432_v1 = vmov 0.0   ;;  %vm27_vm0 = vcmask 1043456   ;;  %vm23_vm1 = vcmask 31744   ;;  %vm433_vm2 = vmmov 0   ;;  %s497_s0 = inlined_call_operand.vmem [shape: f32[2,4,18], index: 0, kind: input, shape index: {}]   ;;  %s498_s1 = inlined_call_operand.vmem [shape: f32[2,8,4], index: 1, kind: input, shape index: {}]   ;;  %s499_s2 = inlined_call_operand.vmem [shape: f32[8,1], index: 2, kind: input, shape index: {}]   ;;  %s500_s3 = inlined_call_operand.hbm [shape: f32[2,8,16], index: 3, kind: output, shape index: {}]  }
   0x1   :  { %v17_v0 = vld [vmem:[%s497_s0] sm:$0xf]  ;;  %378 = vmatprep.subr.mxu0 %v432_v1  ;;  %v364_v3 = vld [vmem:[%s497_s0 + $0x4] sm:$0xf]  ;;  %383 = vmatprep.subr.mxu1 %v432_v1 }
   0x2   :  { %21 = vrot.lane.b32.xlu0 %v17_v0, %s431_s14  ;;  %v16_v2 = vld [vmem:[%s498_s1] sm:$0xff]  ;;  %380 = vmatprep.mubr.msk.f32.mxu0 %vm433_vm2, %v432_v1 }
   0x3   :  { %8 = vsyncpa [#allocation3], 0  ;;  %384 = vmatpush3.msk.msra.mxu1 %vm27_vm0, %v17_v0  ;;  %385 = vmatprep.mubr.msk.f32.mxu1 %vm433_vm2, %v432_v1  ;;  %v15_v4 = vld [vmem:[%s499_s2] sm:$0xff]  ;;  %v434_v5 = vmov 0   ;;  %v359_v6 = vld [vmem:[%s498_s1 + $0x8] sm:$0xff]  ;;  %vm181_vm3 = vcmask 130048  }
   0x4   :  { %386 = vmatmul.mubr.msk.f32.vlgmr.msra.gmra.mrb[0].mxu1 %vm23_vm1, %v16_v2  ;;  %393 = vmatprep.subr.mxu1 %v432_v1  ;;  %s435_s1 = smov [#allocation2]  }
   0x5   :  { %394 = vmatpush3.msk.msra.mxu1 %vm27_vm0, %v364_v3  ;;  %395 = vmatprep.mubr.msk.f32.mxu1 %vm433_vm2, %v432_v1  ;;  %s348_s2 = sshll.u32 %s435_s1, 4  ;;  %s349_s2 = int_to_ptr.vmem [resolvable:$true] %s348_s2 }
   0x6   :  { %188 = vrot.lane.b32.xlu0 %v364_v3, %s431_s14  ;;  %405 = vset.pattern.permute.xlu1 %v434_v5  ;;  %s407_s22 = scalar_lea.vmem %s349_s2, 256  ;;  %p412_p1 = scmp.lt.s32.totalorder %s349_s2, %s349_s2 }
   0x7   :  { %177 = vperm.xlu1 %405, %v15_v4   ;;  %406 = vset.pattern.permute.xlu0 %v434_v5  ;;  %p408_p0 = scmp.ne.s32.totalorder %s349_s2, %s407_s22  ;;  %p413_p2 = scmp.lt.s32.totalorder %s407_s22, %s407_s22 }
   0x8   :  { %396 = vmatmul.mubr.msk.f32.vlgmr.msra.gmra.mrb[2].mxu1 %vm23_vm1, %v16_v2 }
   0x9   :  { %p414_p3 = por %p413_p2, %p412_p1 }
   0xb   :  { %p415_p4 = pnand %p414_p3, %p408_p0 }
  0x74   :  { %v22_v7 = vpop.permute.xlu0 %21 }
  0x75   :  { %379 = vmatpush3.msk.msra.mxu0 %vm27_vm0, %v22_v7 }
  0x76   :  { %381 = vmatmul.mubr.msk.f32.vlgmr.msra.gmra.mrb[0].mxu0 %vm23_vm1, %v359_v6  ;;  %388 = vmatprep.subr.mxu0 %v432_v1 }
  0x77   :  { %390 = vmatprep.mubr.msk.f32.mxu0 %vm433_vm2, %v432_v1 }
  0x78   :  { %v189_v8 = vpop.permute.xlu0 %188 }
  0x79   :  { %389 = vmatpush3.msk.msra.mxu0 %vm27_vm0, %v189_v8 }
  0x7a   :  { %391 = vmatmul.mubr.msk.f32.vlgmr.msra.gmra.mrb[2].mxu0 %vm23_vm1, %v359_v6 }
  0x86   :  { %v178_v14 = vpop.permute.xlu1 %177 }
  0xd7   :  { %v171_v9 = vpop.f32.mrb[0].mxu1 }
  0xd8   :  { %v387_v10 = vpop.f32.mrb[1].mxu1 }
  0xdb   :  { %v336_v11 = vpop.f32.mrb[2].mxu1 }
  0xdc   :  { %v397_v12 = vpop.f32.mrb[3].mxu1 }
 0x149   :  { %v96_v13 = vpop.f32.mrb[0].mxu0 }
 0x14a   :  { %v172_v15 = vadd.f32 %v171_v9, %v96_v13  ;;  %v382_v16 = vpop.f32.mrb[1].mxu0 }
 0x14c   :  { %v180_v17 = vadd.f32 %v178_v14, %v172_v15 }
 0x14d   :  { %v261_v18 = vpop.f32.mrb[2].mxu0 }
 0x14e   :  { %182 = vst.msk [vmem:[#allocation2] sm:$0xff] %vm181_vm3, %v180_v17  ;;  %v337_v19 = vadd.f32 %v336_v11, %v261_v18  ;;  %v392_v20 = vpop.f32.mrb[3].mxu0 }
 0x150   :  { %v340_v21 = vadd.f32 %v337_v19, %v178_v14 }
 0x152   :  { %342 = vst.msk [vmem:[#allocation2 + $0x8] sm:$0xff] %vm181_vm3, %v340_v21 }
 0x153   :  { %418 = shalt.err (!%p415_p4)
}
 0x154   :  { %s419_s25 = scalar_lea.hbm %s500_s3, 256 }
 0x155   :  { %p420_p5 = scmp.ne.s32.totalorder %s500_s3, %s419_s25  ;;  %p423_p6 = scmp.lt.u32.totalorder %s419_s25, %s500_s3 }
 0x157   :  { %p425_p7 = pnand %p423_p6, %p420_p5 }
 0x159   :  { %428 = shalt.err (!%p425_p7)
}
 0x15a   :  { %s436_s30 = smov 128   ;;  %s437_s4 = smov 8  }
 0x15b   :  { %354 = dma.vmem_to_hbm [thread:$0]  %s349_s2, 256, %s500_s3, [#allocation3], %s436_s30, %s436_s30, %s437_s4  }
 0x15c   :  { %429 = dma.done.wait [#allocation3], 256  }
 0x15d   :  { %430 = vsyncadd [#allocation3], 4294967040 }
 0x15e   :  { %358 = vsyncpa [#allocation3], 1 }

</bundles_post_ra>
